<compile_context>
chip_gen: v6e
topology: v6e:2x2x1
jax: 0.10.0
libtpu: 0.0.40
codegen_flags: <defaults>
</compile_context>

<pallas_src>
import jax
import jax.numpy as jnp
from jax.experimental import pallas as pl
from jax.experimental.pallas import tpu as pltpu


# ----------------------------- kernels ------------------------------------ #

def _se_kernel_cfirst(x_ref, w1t_ref, b1_ref, w2t_ref, b2_ref, o_ref):
    # x_ref/o_ref: (TB, c, hw) -- channels on sublanes, spatial on the lane axis.
    x = x_ref[...]                                        # native dtype, no f32 copy held
    inv_hw = 1.0 / x_ref.shape[-1]

    # squeeze: mean over spatial (lane axis), f32 accumulation
    pooled = jnp.sum(x, axis=-1, dtype=jnp.float32) * inv_hw          # (TB, c)

    # excitation: Linear -> ReLU6 -> Linear -> HardSwish (weights pre-transposed)
    z = jnp.dot(pooled, w1t_ref[...],
                preferred_element_type=jnp.float32) + b1_ref[...]     # (TB, mid)
    z = jnp.clip(z, 0.0, 6.0)
    s = jnp.dot(z, w2t_ref[...],
                preferred_element_type=jnp.float32) + b2_ref[...]     # (TB, c)
    s = s * jnp.clip(s + 3.0, 0.0, 6.0) * (1.0 / 6.0)

    # scale: broadcast s over the lane (spatial) axis
    o_ref[...] = (x * s.astype(x.dtype)[:, :, None]).astype(o_ref.dtype)


def _se_kernel_clast(x_ref, w1t_ref, b1_ref, w2t_ref, b2_ref, o_ref):
    # x_ref/o_ref: (TB, hw, c) -- channels on the 128-lane axis (lane-dense stores).
    x = x_ref[...]                                        # native dtype, no f32 copy held
    inv_hw = 1.0 / x_ref.shape[1]

    # squeeze: mean over spatial (sublane axis), f32 accumulation
    pooled = jnp.sum(x, axis=1, dtype=jnp.float32) * inv_hw           # (TB, c)

    z = jnp.dot(pooled, w1t_ref[...],
                preferred_element_type=jnp.float32) + b1_ref[...]     # (TB, mid)
    z = jnp.clip(z, 0.0, 6.0)
    s = jnp.dot(z, w2t_ref[...],
                preferred_element_type=jnp.float32) + b2_ref[...]     # (TB, c)
    s = s * jnp.clip(s + 3.0, 0.0, 6.0) * (1.0 / 6.0)

    # scale: cheap sublane broadcast of s
    o_ref[...] = (x * s.astype(x.dtype)[:, None, :]).astype(o_ref.dtype)


# ----------------------------- wrapper ------------------------------------ #

def _vmem_capacity_bytes():
    try:
        return int(pltpu.get_tpu_info().vmem_capacity_bytes)
    except Exception:
        return 64 << 20   # conservative: assume v7x-class per-core VMEM


def _se_flat_call(x, w1, b1, w2, b2, *, channels_last, vmem_tile_budget_bytes=None):
    """x: (b, hw, c) if channels_last else (b, c, hw). Returns same layout."""
    b = x.shape[0]
    if channels_last:
        hw, c = x.shape[1], x.shape[2]
    else:
        c, hw = x.shape[1], x.shape[2]
    mid = w1.shape[0]

    # Pre-transpose weights in the wrapper (no in-kernel XLU transpose).
    w1t = jnp.transpose(w1)            # (c, mid)
    w2t = jnp.transpose(w2)            # (mid, c)
    b1_2d = b1.reshape(1, mid)
    b2_2d = b2.reshape(1, c)

    # --- generation-aware VMEM budgets ---
    vmem_cap = _vmem_capacity_bytes()
    if vmem_cap <= (64 << 20):         # v7x-class: 64 MiB physical -> leave Mosaic headroom
        limit_cap = 52 << 20
        default_budget = 14 << 20
    else:                              # v5e/v6e: 128 MiB physical
        limit_cap = 104 << 20
        default_budget = 40 << 20
    tile_budget = default_budget if vmem_tile_budget_bytes is None else vmem_tile_budget_bytes

    # --- batch tile sizing: (in + out) x double-buffer = 4 copies of the tile ---
    dtype_bytes = jnp.dtype(x.dtype).itemsize
    per_batch_bytes = c * hw * dtype_bytes
    tb = max(1, int(tile_budget // (4 * per_batch_bytes)))
    # Keep >= ~4 grid steps so the BlockSpec pipeline actually overlaps DMA with compute
    # and the "parallel" batch axis shards across both TensorCores on v7x.
    tb = min(tb, max(1, pl.cdiv(b, 4)))
    tb = max(1, min(b, tb))
    n_tiles = pl.cdiv(b, tb)

    block_shape = (tb, hw, c) if channels_last else (tb, c, hw)
    kernel = _se_kernel_clast if channels_last else _se_kernel_cfirst

    weight_bytes = sum(int(a.size) * jnp.dtype(a.dtype).itemsize
                       for a in (w1t, b1_2d, w2t, b2_2d))
    # HBM-bound custom call: tell the XLA scheduler so surrounding ops schedule around it.
    cost = pl.CostEstimate(
        flops=int(4 * b * c * mid + 8 * b * c * hw),
        transcendentals=0,
        bytes_accessed=int(2 * b * per_batch_bytes + weight_bytes),
    )

    def _call(single_buffer_weights):
        if single_buffer_weights:
            # Constant index_map => resident; single-buffer so the pipeline does not
            # allocate a second, dead VMEM copy per weight operand.
            def wspec(shape):
                return pl.BlockSpec(shape, lambda i: (0, 0), pipeline_mode=pl.Buffered(1))
            weight_vmem = weight_bytes
        else:
            def wspec(shape):
                return pl.BlockSpec(shape, lambda i: (0, 0))
            weight_vmem = 2 * weight_bytes

        tile_vmem = 4 * tb * per_batch_bytes
        vmem_limit = int(min(max(tile_vmem + weight_vmem + (8 << 20), 32 << 20), limit_cap))

        return pl.pallas_call(
            kernel,
            out_shape=jax.ShapeDtypeStruct(x.shape, x.dtype),
            grid_spec=pltpu.PrefetchScalarGridSpec(
                num_scalar_prefetch=0,
                grid=(n_tiles,),
                in_specs=[
                    pl.BlockSpec(block_shape, lambda i: (i, 0, 0)),
                    wspec((c, mid)),
                    wspec((1, mid)),
                    wspec((mid, c)),
                    wspec((1, c)),
                ],
                out_specs=pl.BlockSpec(block_shape, lambda i: (i, 0, 0)),
            ),
            compiler_params=pltpu.CompilerParams(
                dimension_semantics=("parallel",),
                vmem_limit_bytes=vmem_limit,
            ),
            cost_estimate=cost,
        )(x, w1t, b1_2d, w2t, b2_2d)

    try:
        return _call(single_buffer_weights=True)
    except Exception:
        # Fallback if this jax version rejects pl.Buffered(1) on a top-level BlockSpec.
        return _call(single_buffer_weights=False)


def squeeze_excitation(x_nchw, w1, b1, w2, b2, *, kernel_size=None,
                       vmem_tile_budget_bytes=None):
    """x_nchw: (b, c, h, w). Returns (b, c, h, w)."""
    b, c, h, w = x_nchw.shape
    hw = h * w
    out_chans = w2.shape[0]
    assert out_chans == c, "out.view(b, c, 1, 1) in the torch module requires out_chans == c"
    # AvgPool2d(kernel_size, stride=1) only collapses the whole spatial extent to 1x1
    # when kernel_size == H == W (as the torch module's view(b, -1) assumes).
    assert h == w, "SqueezeExcitation expects square feature maps (h == w)"
    if kernel_size is not None:
        assert h == kernel_size, "AvgPool2d kernel_size must equal the spatial extent"

    # Layout choice: put the lane-dense axis last.  Real SE shapes (c >= 128, hw < 128)
    # go channels-last; small-channel / large-spatial shapes stay channel-first.
    # (NHWC-native callers can reshape to (b, hw, c) for free and use the channels-last
    #  path directly; for this NCHW entry point the transpose is wrapper-side plumbing.)
    channels_last = (c >= 128) and (c >= hw)

    if channels_last:
        x_flat = jnp.transpose(x_nchw.reshape(b, c, hw), (0, 2, 1))   # (b, hw, c)
        out = _se_flat_call(x_flat, w1, b1, w2, b2, channels_last=True,
                            vmem_tile_budget_bytes=vmem_tile_budget_bytes)
        return jnp.transpose(out, (0, 2, 1)).reshape(b, c, h, w)
    else:
        x_flat = x_nchw.reshape(b, c, hw)                              # (b, c, hw)
        out = _se_flat_call(x_flat, w1, b1, w2, b2, channels_last=False,
                            vmem_tile_budget_bytes=vmem_tile_budget_bytes)
        return out.reshape(b, c, h, w)


# ----------------------------- reference ---------------------------------- #

def se_reference(x_nchw, w1, b1, w2, b2):
    """Pure-JAX reference matching the PyTorch forward."""
    xf = x_nchw.astype(jnp.float32)
    pooled = jnp.mean(xf, axis=(2, 3))                                 # (b, c)
    z = jnp.clip(pooled @ w1.T + b1, 0.0, 6.0)
    s = z @ w2.T + b2
    s = s * jnp.clip(s + 3.0, 0.0, 6.0) / 6.0
    return (s[:, :, None, None] * xf).astype(x_nchw.dtype)


# ------------------------------- main -------------------------------------- #

if __name__ == "__main__":
    def run_case(batch, in_chans, kernel_size, divide, key):
        mid = max(1, in_chans // divide)
        h = w = kernel_size  # avgpool(kernel_size, stride=1) reduces spatial dims to 1x1
        kx, k1, k2, k3, k4 = jax.random.split(key, 5)
        x = jax.random.normal(kx, (batch, in_chans, h, w), dtype=jnp.float32)
        # Deterministic synthetic parameters (shapes from nn.Linear in __init__).
        w1 = jax.random.normal(k1, (mid, in_chans), dtype=jnp.float32) * 0.3
        b1 = jax.random.normal(k2, (mid,), dtype=jnp.float32) * 0.1
        w2 = jax.random.normal(k3, (in_chans, mid), dtype=jnp.float32) * 0.3
        b2 = jax.random.normal(k4, (in_chans,), dtype=jnp.float32) * 0.1

        out = squeeze_excitation(x, w1, b1, w2, b2, kernel_size=kernel_size)
        out = jax.block_until_ready(out)

        ref = se_reference(x, w1, b1, w2, b2)
        assert out.shape == x.shape
        assert jnp.allclose(out, ref, atol=1e-5, rtol=1e-5), "mismatch vs reference"

    key = jax.random.PRNGKey(0)
    k0, k1 = jax.random.split(key)

    # Module config SqueezeExcitation(in_chans=8, out_chans=8, kernel_size=16, divide=4):
    # exercises the channel-first (spatial lane-dense) path.
    run_case(batch=2, in_chans=8, kernel_size=16, divide=4, key=k0)

    # Realistic-SE-style config (c >= 128, hw < 128): exercises the channels-last
    # (channel lane-dense) path.
    run_case(batch=4, in_chans=128, kernel_size=4, divide=4, key=k1)

    print("KERNEL_OK")
</pallas_src>

<mosaic_0001>
module attributes {stable_mosaic.version = 11 : i64} {
  func.func @_se_kernel_cfirst(%arg0: i32, %arg1: memref<1x8x256xf32, #tpu.memory_space<vmem>>, %arg2: memref<8x2xf32, #tpu.memory_space<vmem>>, %arg3: memref<1x2xf32, #tpu.memory_space<vmem>>, %arg4: memref<2x8xf32, #tpu.memory_space<vmem>>, %arg5: memref<1x8xf32, #tpu.memory_space<vmem>>, %arg6: memref<1x8x256xf32, #tpu.memory_space<vmem>>) attributes {dimension_semantics = [#tpu.dimension_semantics<parallel>], iteration_bounds = array<i64: 2>, scalar_prefetch = 0 : i64, scratch_operands = 0 : i64, tpu.core_type = #tpu.core_type<tc>, window_params = [{transform_indices = @transform_0, window_bounds = array<i64: 1, 8, 256>}, {pipeline_mode = #tpu.pipeline_mode<synchronous>, transform_indices = @transform_1, window_bounds = array<i64: 8, 2>}, {pipeline_mode = #tpu.pipeline_mode<synchronous>, transform_indices = @transform_2, window_bounds = array<i64: 1, 2>}, {pipeline_mode = #tpu.pipeline_mode<synchronous>, transform_indices = @transform_3, window_bounds = array<i64: 2, 8>}, {pipeline_mode = #tpu.pipeline_mode<synchronous>, transform_indices = @transform_4, window_bounds = array<i64: 1, 8>}, {transform_indices = @transform_5, window_bounds = array<i64: 1, 8, 256>}]} {
    %c0 = arith.constant 0 : index
    %c0_0 = arith.constant 0 : index
    %c0_1 = arith.constant 0 : index
    %0 = vector.load %arg1[%c0, %c0_0, %c0_1] : memref<1x8x256xf32, #tpu.memory_space<vmem>>, vector<1x8x256xf32>
    %cst = arith.constant dense<0.000000e+00> : vector<1x8xf32>
    %1 = vector.multi_reduction <add>, %0, %cst [2] : vector<1x8x256xf32> to vector<1x8xf32>
    %cst_2 = arith.constant 3.906250e-03 : f32
    %2 = vector.broadcast %cst_2 : f32 to vector<1x8xf32>
    %3 = arith.mulf %1, %2 : vector<1x8xf32>
    %c0_3 = arith.constant 0 : index
    %c0_4 = arith.constant 0 : index
    %4 = vector.load %arg2[%c0_3, %c0_4] : memref<8x2xf32, #tpu.memory_space<vmem>>, vector<8x2xf32>
    %cst_5 = arith.constant dense<0.000000e+00> : vector<1x2xf32>
    %5 = tpu.matmul %3, %4, %cst_5 {dimension_numbers = #tpu.dot_dimension_numbers<[1], [0], [0], [1], [0, 0, 1, 1], [], []>} : vector<1x8xf32>, vector<8x2xf32>, vector<1x2xf32> -> vector<1x2xf32>
    %c0_6 = arith.constant 0 : index
    %c0_7 = arith.constant 0 : index
    %6 = vector.load %arg3[%c0_6, %c0_7] : memref<1x2xf32, #tpu.memory_space<vmem>>, vector<1x2xf32>
    %7 = arith.addf %5, %6 : vector<1x2xf32>
    %cst_8 = arith.constant 0.000000e+00 : f32
    %cst_9 = arith.constant 6.000000e+00 : f32
    %8 = vector.broadcast %cst_8 : f32 to vector<1x2xf32>
    %9 = arith.maximumf %8, %7 : vector<1x2xf32>
    %10 = vector.broadcast %cst_9 : f32 to vector<1x2xf32>
    %11 = arith.minimumf %10, %9 : vector<1x2xf32>
    %c0_10 = arith.constant 0 : index
    %c0_11 = arith.constant 0 : index
    %12 = vector.load %arg4[%c0_10, %c0_11] : memref<2x8xf32, #tpu.memory_space<vmem>>, vector<2x8xf32>
    %cst_12 = arith.constant dense<0.000000e+00> : vector<1x8xf32>
    %13 = tpu.matmul %11, %12, %cst_12 {dimension_numbers = #tpu.dot_dimension_numbers<[1], [0], [0], [1], [0, 0, 1, 1], [], []>} : vector<1x2xf32>, vector<2x8xf32>, vector<1x8xf32> -> vector<1x8xf32>
    %c0_13 = arith.constant 0 : index
    %c0_14 = arith.constant 0 : index
    %14 = vector.load %arg5[%c0_13, %c0_14] : memref<1x8xf32, #tpu.memory_space<vmem>>, vector<1x8xf32>
    %15 = arith.addf %13, %14 : vector<1x8xf32>
    %cst_15 = arith.constant 3.000000e+00 : f32
    %16 = vector.broadcast %cst_15 : f32 to vector<1x8xf32>
    %17 = arith.addf %15, %16 : vector<1x8xf32>
    %cst_16 = arith.constant 0.000000e+00 : f32
    %cst_17 = arith.constant 6.000000e+00 : f32
    %18 = vector.broadcast %cst_16 : f32 to vector<1x8xf32>
    %19 = arith.maximumf %18, %17 : vector<1x8xf32>
    %20 = vector.broadcast %cst_17 : f32 to vector<1x8xf32>
    %21 = arith.minimumf %20, %19 : vector<1x8xf32>
    %22 = arith.mulf %15, %21 : vector<1x8xf32>
    %cst_18 = arith.constant 0.166666672 : f32
    %23 = vector.broadcast %cst_18 : f32 to vector<1x8xf32>
    %24 = arith.mulf %22, %23 : vector<1x8xf32>
    %25 = vector.shape_cast %24 : vector<1x8xf32> to vector<1x8x1xf32>
    %26 = vector.broadcast %25 : vector<1x8x1xf32> to vector<1x8x256xf32>
    %27 = arith.mulf %0, %26 : vector<1x8x256xf32>
    %c0_19 = arith.constant 0 : index
    %c0_20 = arith.constant 0 : index
    %c0_21 = arith.constant 0 : index
    %28 = vector.load %arg6[%c0_19, %c0_20, %c0_21] : memref<1x8x256xf32, #tpu.memory_space<vmem>>, vector<1x8x256xf32>
    tpu.vector_store %arg6[%c0_19, %c0_20, %c0_21], %27 {strides = array<i32>} : memref<1x8x256xf32, #tpu.memory_space<vmem>>, vector<1x8x256xf32>,
    return
  }
  func.func @transform_0(%arg0: i32) -> (i32, i32, i32) {
    %c0_i32 = arith.constant 0 : i32
    %c0_i32_0 = arith.constant 0 : i32
    %c0_i32_1 = arith.constant 0 : i32
    return %arg0, %c0_i32, %c0_i32_0 : i32, i32, i32
  }
  func.func @transform_1(%arg0: i32) -> (i32, i32) {
    %c0_i32 = arith.constant 0 : i32
    %c0_i32_0 = arith.constant 0 : i32
    %c0_i32_1 = arith.constant 0 : i32
    return %c0_i32, %c0_i32_0 : i32, i32
  }
  func.func @transform_2(%arg0: i32) -> (i32, i32) {
    %c0_i32 = arith.constant 0 : i32
    %c0_i32_0 = arith.constant 0 : i32
    %c0_i32_1 = arith.constant 0 : i32
    return %c0_i32, %c0_i32_0 : i32, i32
  }
  func.func @transform_3(%arg0: i32) -> (i32, i32) {
    %c0_i32 = arith.constant 0 : i32
    %c0_i32_0 = arith.constant 0 : i32
    %c0_i32_1 = arith.constant 0 : i32
    return %c0_i32, %c0_i32_0 : i32, i32
  }
  func.func @transform_4(%arg0: i32) -> (i32, i32) {
    %c0_i32 = arith.constant 0 : i32
    %c0_i32_0 = arith.constant 0 : i32
    %c0_i32_1 = arith.constant 0 : i32
    return %c0_i32, %c0_i32_0 : i32, i32
  }
  func.func @transform_5(%arg0: i32) -> (i32, i32, i32) {
    %c0_i32 = arith.constant 0 : i32
    %c0_i32_0 = arith.constant 0 : i32
    %c0_i32_1 = arith.constant 0 : i32
    return %arg0, %c0_i32, %c0_i32_0 : i32, i32, i32
  }
}

module attributes {stable_mosaic.version = 11 : i64} {
  func.func @_se_kernel_cfirst(%arg0: i32, %arg1: memref<1x8x256xf32, #tpu.memory_space<vmem>>, %arg2: memref<8x2xf32, #tpu.memory_space<vmem>>, %arg3: memref<1x2xf32, #tpu.memory_space<vmem>>, %arg4: memref<2x8xf32, #tpu.memory_space<vmem>>, %arg5: memref<1x8xf32, #tpu.memory_space<vmem>>, %arg6: memref<1x8x256xf32, #tpu.memory_space<vmem>>) attributes {dimension_semantics = [#tpu.dimension_semantics<parallel>], iteration_bounds = array<i64: 2>, scalar_prefetch = 0 : i64, scratch_operands = 0 : i64, tpu.core_type = #tpu.core_type<tc>, window_params = [{transform_indices = @transform_0, window_bounds = array<i64: 1, 8, 256>}, {pipeline_mode = #tpu.pipeline_mode<synchronous>, transform_indices = @transform_1, window_bounds = array<i64: 8, 2>}, {pipeline_mode = #tpu.pipeline_mode<synchronous>, transform_indices = @transform_2, window_bounds = array<i64: 1, 2>}, {pipeline_mode = #tpu.pipeline_mode<synchronous>, transform_indices = @transform_3, window_bounds = array<i64: 2, 8>}, {pipeline_mode = #tpu.pipeline_mode<synchronous>, transform_indices = @transform_4, window_bounds = array<i64: 1, 8>}, {transform_indices = @transform_5, window_bounds = array<i64: 1, 8, 256>}]} {
    %c0 = arith.constant 0 : index
    %c0_0 = arith.constant 0 : index
    %c0_1 = arith.constant 0 : index
    %0 = vector.load %arg1[%c0, %c0_0, %c0_1] : memref<1x8x256xf32, #tpu.memory_space<vmem>>, vector<1x8x256xf32>
    %cst = arith.constant dense<0.000000e+00> : vector<1x8xf32>
    %1 = vector.multi_reduction <add>, %0, %cst [2] : vector<1x8x256xf32> to vector<1x8xf32>
    %cst_2 = arith.constant 3.906250e-03 : f32
    %2 = vector.broadcast %cst_2 : f32 to vector<1x8xf32>
    %3 = arith.mulf %1, %2 : vector<1x8xf32>
    %c0_3 = arith.constant 0 : index
    %c0_4 = arith.constant 0 : index
    %4 = vector.load %arg2[%c0_3, %c0_4] : memref<8x2xf32, #tpu.memory_space<vmem>>, vector<8x2xf32>
    %cst_5 = arith.constant dense<0.000000e+00> : vector<1x2xf32>
    %5 = tpu.matmul %3, %4, %cst_5 {dimension_numbers = #tpu.dot_dimension_numbers<[1], [0], [0], [1], [0, 0, 1, 1], [], []>} : vector<1x8xf32>, vector<8x2xf32>, vector<1x2xf32> -> vector<1x2xf32>
    %c0_6 = arith.constant 0 : index
    %c0_7 = arith.constant 0 : index
    %6 = vector.load %arg3[%c0_6, %c0_7] : memref<1x2xf32, #tpu.memory_space<vmem>>, vector<1x2xf32>
    %7 = arith.addf %5, %6 : vector<1x2xf32>
    %cst_8 = arith.constant 0.000000e+00 : f32
    %cst_9 = arith.constant 6.000000e+00 : f32
    %8 = vector.broadcast %cst_8 : f32 to vector<1x2xf32>
    %9 = arith.maximumf %8, %7 : vector<1x2xf32>
    %10 = vector.broadcast %cst_9 : f32 to vector<1x2xf32>
    %11 = arith.minimumf %10, %9 : vector<1x2xf32>
    %c0_10 = arith.constant 0 : index
    %c0_11 = arith.constant 0 : index
    %12 = vector.load %arg4[%c0_10, %c0_11] : memref<2x8xf32, #tpu.memory_space<vmem>>, vector<2x8xf32>
    %cst_12 = arith.constant dense<0.000000e+00> : vector<1x8xf32>
    %13 = tpu.matmul %11, %12, %cst_12 {dimension_numbers = #tpu.dot_dimension_numbers<[1], [0], [0], [1], [0, 0, 1, 1], [], []>} : vector<1x2xf32>, vector<2x8xf32>, vector<1x8xf32> -> vector<1x8xf32>
    %c0_13 = arith.constant 0 : index
    %c0_14 = arith.constant 0 : index
    %14 = vector.load %arg5[%c0_13, %c0_14] : memref<1x8xf32, #tpu.memory_space<vmem>>, vector<1x8xf32>
    %15 = arith.addf %13, %14 : vector<1x8xf32>
    %cst_15 = arith.constant 3.000000e+00 : f32
    %16 = vector.broadcast %cst_15 : f32 to vector<1x8xf32>
    %17 = arith.addf %15, %16 : vector<1x8xf32>
    %cst_16 = arith.constant 0.000000e+00 : f32
    %cst_17 = arith.constant 6.000000e+00 : f32
    %18 = vector.broadcast %cst_16 : f32 to vector<1x8xf32>
    %19 = arith.maximumf %18, %17 : vector<1x8xf32>
    %20 = vector.broadcast %cst_17 : f32 to vector<1x8xf32>
    %21 = arith.minimumf %20, %19 : vector<1x8xf32>
    %22 = arith.mulf %15, %21 : vector<1x8xf32>
    %cst_18 = arith.constant 0.166666672 : f32
    %23 = vector.broadcast %cst_18 : f32 to vector<1x8xf32>
    %24 = arith.mulf %22, %23 : vector<1x8xf32>
    %25 = vector.shape_cast %24 : vector<1x8xf32> to vector<1x8x1xf32>
    %26 = vector.broadcast %25 : vector<1x8x1xf32> to vector<1x8x256xf32>
    %27 = arith.mulf %0, %26 : vector<1x8x256xf32>
    %c0_19 = arith.constant 0 : index
    %c0_20 = arith.constant 0 : index
    %c0_21 = arith.constant 0 : index
    %28 = vector.load %arg6[%c0_19, %c0_20, %c0_21] : memref<1x8x256xf32, #tpu.memory_space<vmem>>, vector<1x8x256xf32>
    tpu.vector_store %arg6[%c0_19, %c0_20, %c0_21], %27 {strides = array<i32>} : memref<1x8x256xf32, #tpu.memory_space<vmem>>, vector<1x8x256xf32>,
    return
  }
  func.func @transform_0(%arg0: i32) -> (i32, i32, i32) {
    %c0_i32 = arith.constant 0 : i32
    %c0_i32_0 = arith.constant 0 : i32
    %c0_i32_1 = arith.constant 0 : i32
    return %arg0, %c0_i32, %c0_i32_0 : i32, i32, i32
  }
  func.func @transform_1(%arg0: i32) -> (i32, i32) {
    %c0_i32 = arith.constant 0 : i32
    %c0_i32_0 = arith.constant 0 : i32
    %c0_i32_1 = arith.constant 0 : i32
    return %c0_i32, %c0_i32_0 : i32, i32
  }
  func.func @transform_2(%arg0: i32) -> (i32, i32) {
    %c0_i32 = arith.constant 0 : i32
    %c0_i32_0 = arith.constant 0 : i32
    %c0_i32_1 = arith.constant 0 : i32
    return %c0_i32, %c0_i32_0 : i32, i32
  }
  func.func @transform_3(%arg0: i32) -> (i32, i32) {
    %c0_i32 = arith.constant 0 : i32
    %c0_i32_0 = arith.constant 0 : i32
    %c0_i32_1 = arith.constant 0 : i32
    return %c0_i32, %c0_i32_0 : i32, i32
  }
  func.func @transform_4(%arg0: i32) -> (i32, i32) {
    %c0_i32 = arith.constant 0 : i32
    %c0_i32_0 = arith.constant 0 : i32
    %c0_i32_1 = arith.constant 0 : i32
    return %c0_i32, %c0_i32_0 : i32, i32
  }
  func.func @transform_5(%arg0: i32) -> (i32, i32, i32) {
    %c0_i32 = arith.constant 0 : i32
    %c0_i32_0 = arith.constant 0 : i32
    %c0_i32_1 = arith.constant 0 : i32
    return %arg0, %c0_i32, %c0_i32_0 : i32, i32, i32
  }
}

</mosaic_0001>

<bundles_post_ra>
// kernel: tpu_custom_call.1
= control target key start
LH: loop header
LB: loop body
LE: loop exit
PB: predicated region body
PF: predicated region fallthrough
CT: control target
= control target key end

     0   :  { %10 = vsyncpa [#allocation3], 0  ;;  %s884_s0 = inlined_call_operand.hbm [shape: f32[2,8,256], index: 0, kind: input, shape index: {}]   ;;  %s885_s1 = inlined_call_operand.vmem [shape: f32[8,2], index: 1, kind: input, shape index: {}]   ;;  %s886_s2 = inlined_call_operand.vmem [shape: f32[1,2], index: 2, kind: input, shape index: {}]   ;;  %s887_s3 = inlined_call_operand.vmem [shape: f32[2,8], index: 3, kind: input, shape index: {}]   ;;  %s888_s4 = inlined_call_operand.vmem [shape: f32[1,8], index: 4, kind: input, shape index: {}]   ;;  %s889_s5 = inlined_call_operand.hbm [shape: f32[2,8,256], index: 5, kind: output, shape index: {}]  }
   0x1   :  { %12 = vsyncpa [#allocation3 + $0x1], 0 }
   0x2   :  { %13 = vsyncpa [#allocation4], 0 }
   0x3   :  { %15 = vsyncpa [#allocation4 + $0x1], 0  ;;  %s721_s18 = smov 0   ;;  %s723_s19 = smov 0  }
   0x4   :  { %s725_s20 = smov 0   ;;  %s727_s21 = smov 0  }
   0x5 LB: > { %s742_s22 = sadd.s32 4294967295, %s685_s21   ;;  %s512_s23 = sadd.s32 4294967294, %s685_s21   ;;  %s685_s21 = sphi %s727_s21, %s906_s21   ;;  %s681_s20 = sphi %s725_s20, %s905_s20   ;;  %s677_s19 = sphi %s723_s19, %s904_s19   ;;  %s673_s18 = sphi %s721_s18, %s903_s18  }
   0x6   : > { %s746_s24 = sadd.s32 1, %s685_s21   ;;  %s28_s25 = sadd.s32 1, %s681_s20 }
   0x7   : > { %s25_s26 = ssub.s32 %s685_s21, %s746_s24  ;;  %p35_p0 = scmp.ne.s32.totalorder %s681_s20, %s677_s19 }
   0x8   : > { %p26_p1 = scmp.eq.s32.totalorder %s25_s26, 0  ;;  %p36_p2 = scmp.eq.s32.totalorder %s685_s21, 0 }
   0x9   : > { %p41_p3 = scmp.ne.s32.totalorder %s677_s19, %s673_s18  ;;  %p42_p4 = scmp.eq.s32.totalorder %s742_s22, 0 }
   0xa   : > { %s758_s27 = scalar_select %p26_p1, %s681_s20, %s28_s25  }
   0xb   : > { %p760_p5 = por %p36_p2, %p35_p0  ;;  %p764_p6 = por %p42_p4, %p41_p3 }
   0xc   : > { %p149_p7 = scmp.eq.s32.totalorder %s742_s22, 1  ;;  %p155_p8 = scmp.eq.s32.totalorder %s512_s23, 1 }
   0xd   : > { %s893_s29 = scalar_select %p764_p6, 1, 0 }
   0xe   : > { %p557_p10 = scmp.lt.s32.totalorder %s685_s21, 2  ;;  %p771_p11 = por %p149_p7, %p35_p0 }
   0xf   : > { %p775_p12 = por %p155_p8, %p41_p3  ;;  %s187_s7 = sand.u32 1, %s681_s20  }
  0x10   : > { %s894_s30 = scalar_select %p771_p11, 1, 0 }
  0x11   : > { %s895_s6 = scalar_select %p775_p12, 1, 0 }
  0x12   : > { %s529_s8 = sshll.u32 %s685_s21, 8  ;;  %s515_s9 = sshll.u32 %s187_s7, 4 }
  0x13   : > { %s784_s12 = scalar_lea.hbm %s884_s0, %s529_s8  ;;  %s191_s13 = scalar_lea.vmem [#allocation2], %s515_s9 }
  0x14   : > { %s199_s14 = sshll.u32 %s191_s13, 4  ;;  %p788_p13 = pnand %p557_p10, %p760_p5  ;;  %s792_s14 = int_to_ptr.vmem [resolvable:$true] %s199_s14 }
  0x15   : > { %s188_s16 = scalar_lea.sflag [#allocation3], %s187_s7  ;;  %s593_s17 = scalar_lea.hbm %s784_s12, 256 }
  0x16   : > { %p594_p2 = scmp.ne.s32.totalorder %s784_s12, %s593_s17  ;;  %p595_p3 = pneg %p788_p13 }
  0x17   : > { %s598_s26 = scalar_lea.hbm %s884_s0, 512  ;;  %p599_p5 = scmp.lt.s32.totalorder %s784_s12, %s884_s0 }
  0x18   : > { %p596_p4 = pnand %p595_p3, %p594_p2  ;;  %p600_p8 = scmp.lt.s32.totalorder %s598_s26, %s593_s17 }
  0x1a   : > { %p597_p7 = pneg %p596_p4  ;;  %p601_p10 = por %p600_p8, %p599_p5 }
  0x1c   : > { %p602_p9 = pnand %p601_p10, %p597_p7 }
  0x1e   : > { %605 = shalt.err (!%p602_p9)
}
  0x1f   : > { %s606_s7 = scalar_lea.vmem %s792_s14, 256  ;;  %s687_s9 = smov [#allocation2]  }
  0x20   : > { %p607_p0 = scmp.ne.s32.totalorder %s792_s14, %s606_s7  ;;  %s611_s10 = sshll.u32 %s687_s9, 4  ;;  %s612_s10 = int_to_ptr.vmem [resolvable:$false] %s611_s10 }
  0x21   : > { %s613_s11 = scalar_lea.vmem %s612_s10, 512  ;;  %p614_p4 = scmp.lt.s32.totalorder %s792_s14, %s612_s10 }
  0x22   : > { %p609_p1 = pnand %p607_p0, %p595_p3  ;;  %p615_p12 = scmp.lt.s32.totalorder %s613_s11, %s606_s7 }
  0x24   : > { %p610_p2 = pneg %p609_p1  ;;  %p616_p11 = por %p615_p12, %p614_p4 }
  0x26   : > { %p617_p6 = pnand %p616_p11, %p610_p2 }
  0x28   : > { %620 = shalt.err (!%p617_p6)
}
  0x29   : > { %552 = dma.hbm_to_vmem [thread:$0]  (!%p788_p13), %s784_s12, 256, %s792_s14, %s188_s16  }
  0x2a   : > { %p897_p9 = scmp.lt.s32.totalorder %s685_s21, 3  ;;  %p898_p7 = scmp.ge.s32.totalorder %s685_s21, 1 }
  0x2c   : > { %p205_p0 = pnand %p898_p7, %p897_p9 }
  0x2d   : > { %s819_s13 = sand.u32 (!%p205_p0), 1, %s677_s19   ;;  %p899_p6 = scmp.ne.s32.totalorder (!%p205_p0), %s893_s29, 0 }
  0x2e   : > { %208 = sbr.rel (%p205_p0) target bundleno = 733 (0x2dd), region = 40  ;;  %s519_s17 = sshll.u32 (!%p205_p0), %s819_s13, 4 }
  0x2f   : > { %s211_s23 = scalar_lea.sflag (!%p205_p0), [#allocation3], %s819_s13  ;;  %s214_s15 = scalar_lea.vmem (!%p205_p0), [#allocation2], %s519_s17 }
  0x33   : > { %664 = dma.done.wait (%p899_p6), %s211_s23, 256  }
  0x34   : > { %666 = vsyncadd (%p899_p6), %s211_s23, 4294967040  ;;  %v241_v0 = vld [vmem:[%s214_s15] sm:$0xff]  ;;  %v242_v1 = vld [vmem:[%s214_s15 + $0x8] sm:$0xff]  ;;  %v688_v3 = vmov 0.0   ;;  %vm689_vm0 = vmmov 0   ;;  %v250_v5 = vlaneseq  ;;  %vm256_vm1 = vcmask 64512  }
  0x35   : > { %v243_v2 = vadd.f32 %v242_v1, %v241_v0  ;;  %535 = vmatprep.subr.mxu0 %v688_v3  ;;  %v247_v4 = vld [vmem:[%s885_s1] sm:$0xff]  ;;  %540 = vmatprep.subr.mxu1 %v688_v3  ;;  %vm337_vm2 = vcmask 1041408   ;;  %vm333_vm3 = vcmask 15360   ;;  %s530_s7 = sshll.u32 %s742_s22, 8  ;;  %s240_s9 = scalar_lea.vmem [#allocation5], %s519_s17 }
  0x36   : > { %536 = vmatpush3.msra.mxu0 %v247_v4  ;;  %537 = vmatprep.mubr.msk.f32.mxu0 %vm689_vm0, %v688_v3  ;;  %v251_v6 = vand.u32 127, %v250_v5  ;;  %v253_v7 = vshrl.u32 %v250_v5, 7  ;;  %v331_v12 = vld [vmem:[%s887_s3] sm:$0x3]  ;;  %s442_s10 = sshll.u32 %s240_s9, 4  ;;  %s847_s15 = scalar_lea.hbm %s889_s5, %s530_s7  ;;  %s443_s10 = int_to_ptr.vmem [resolvable:$true] %s442_s10 }
  0x37   : > { %244 = vadd.xlane.f32.xlu0 %v243_v2  ;;  %542 = vmatprep.mubr.msk.f32.mxu1 %vm689_vm0, %v688_v3  ;;  %v248_v13 = vld [vmem:[%s886_s2] sm:$0x1]  ;;  %s428_s12 = scalar_lea.sflag [#allocation4], %s819_s13  ;;  %s621_s14 = scalar_lea.vmem %s443_s10, 256 }
  0x38   : > { %v254_v8 = vsub.s32 %v251_v6, %v253_v7  ;;  %541 = vmatpush3.msk.msra.mxu1 %vm337_vm2, %v331_v12  ;;  %v332_v19 = vld [vmem:[%s888_s4] sm:$0x1]  ;;  %v418_v27 = vsub.s32 0, %v253_v7  ;;  %p622_p11 = scmp.ne.s32.totalorder %s443_s10, %s621_s14  ;;  %p900_p12 = scmp.ne.s32.totalorder %s894_s30, 0 }
  0x39   : > { %s690_s22 = smov [#allocation5]  }
  0x3a   : > { %p623_p13 = pnand %p622_p11, %p900_p12  ;;  %s625_s17 = sshll.u32 %s690_s22, 4  ;;  %s626_s17 = int_to_ptr.vmem [resolvable:$false] %s625_s17 }
  0x3b   : > { %s627_s29 = scalar_lea.vmem %s626_s17, 512  ;;  %p628_p3 = scmp.lt.s32.totalorder %s443_s10, %s626_s17 }
  0x3c   : > { %p624_p1 = pneg %p623_p13  ;;  %p629_p5 = scmp.lt.s32.totalorder %s627_s29, %s621_s14 }
  0x3e   : > { %p630_p8 = por %p629_p5, %p628_p3 }
  0x40   : > { %p631_p10 = pnand %p630_p8, %p624_p1 }
  0xc0   : > { %v245_v9 = vpop.xlane.xlu0 %244 }
  0xc1   : > { %v246_v10 = vmul.f32 0.00390625, %v245_v9 }
  0xc3   : > { %v255_v11 = vrot.slane %v246_v10, %v254_v8 }
  0xc5   : > { %538 = vmatmul.mubr.msk.f32.vlgmr.msra.gmra.mxu0 %vm256_vm1, %v255_v11 }
 0x185   : > { %v325_v14 = vpop.f32.mrf.mxu0 }
 0x186   : > { %v326_v15 = vadd.f32 %v325_v14, %v248_v13 }
 0x187   : > { %v539_v16 = vpop.f32.mrf.mxu0 }
 0x188   : > { %v329_v17 = vmax.f32 %v326_v15, 0.0 }
 0x18a   : > { %v330_v18 = vmin.f32 %v329_v17, 6.0 }
 0x18c   : > { %543 = vmatmul.mubr.msk.f32.vlgmr.msra.gmra.mxu1 %vm333_vm3, %v330_v18 }
 0x24c   : > { %v407_v20 = vpop.f32.mrf.mxu1 }
 0x24d   : > { %v408_v21 = vadd.f32 %v407_v20, %v332_v19 }
 0x24e   : > { %v544_v22 = vpop.f32.mrf.mxu1 }
 0x24f   : > { %v411_v23 = vadd.f32 3.0, %v408_v21 }
 0x251   : > { %v412_v24 = vmax.f32 %v411_v23, 0.0 }
 0x253   : > { %v413_v25 = vmin.f32 %v412_v24, 6.0 }
 0x255   : > { %v414_v26 = vmul.f32 %v413_v25, %v408_v21 }
 0x257   : > { %v415_v28 = vmul.f32 0.16666667, %v414_v26 }
 0x259   : > { %v419_v29 = vrot.slane %v415_v28, %v418_v27 }
 0x25b   : > { %421 = vbcast.lane.b32.xlu0 %v419_v29, 256 }
 0x2cd   : > { %v422_v30 = vpop.permute.xlu0 %421 }
 0x2ce   : > { %v423_v31 = vmul.f32 %v422_v30, %v241_v0  ;;  %v424_v32 = vmul.f32 %v422_v30, %v242_v1 }
 0x2d0   : > { %425 = vst [vmem:[%s240_s9] sm:$0xff] %v423_v31  ;;  %426 = vst [vmem:[%s240_s9 + $0x8] sm:$0xff] %v424_v32 }
 0x2d1   : > { %634 = shalt.err (!%p631_p10)
}
 0x2d2   : > { %s635_s16 = scalar_lea.hbm %s847_s15, 256  ;;  %s639_s26 = scalar_lea.hbm %s889_s5, 512 }
 0x2d3   : > { %p636_p2 = scmp.ne.s32.totalorder %s847_s15, %s635_s16  ;;  %p640_p7 = scmp.lt.s32.totalorder %s847_s15, %s889_s5 }
 0x2d4   : > { %p641_p0 = scmp.lt.s32.totalorder %s639_s26, %s635_s16 }
 0x2d5   : > { %p637_p4 = pnand %p636_p2, %p900_p12 }
 0x2d6   : > { %p642_p6 = por %p641_p0, %p640_p7 }
 0x2d7   : > { %p638_p9 = pneg %p637_p4 }
 0x2d9   : > { %p643_p11 = pnand %p642_p6, %p638_p9 }
 0x2db   : > { %646 = shalt.err (!%p643_p11)
}
 0x2dc   : > { %547 = dma.vmem_to_hbm [thread:$0]  (%p900_p12), %s443_s10, 256, %s847_s15, %s428_s12  }
 0x2dd PF: > { %s454_s7 = sand.u32 1, %s673_s18   ;;  %p901_p13 = scmp.ne.s32.totalorder %s895_s6, 0 }
 0x2de   : > { %p902_p1 = scmp.ge.s32.totalorder %s685_s21, 2  ;;  %s455_s9 = scalar_lea.sflag [#allocation4], %s454_s7 }
 0x2e0   : > { %p554_p3 = pnand %p902_p1, %p901_p13 }
 0x2e2   : > { %p555_p5 = pneg %p554_p3 }
 0x2e4   : > { %668 = dma.done.wait (%p555_p5), %s455_s9, 256  }
 0x2e5   : > { %670 = vsyncadd (%p555_p5), %s455_s9, 4294967040  ;;  %p18_p8 = scmp.ge.s32.totalorder %s746_s24, 4   ;;  %s903_s18 = smov %s677_s19 }
 0x2e6   : > { %s904_s19 = smov %s681_s20  ;;  %s905_s20 = smov %s758_s27 }
 0x2e7   : > { %s906_s21 = smov %s746_s24  ;;  %20 = sbr.rel (!%p18_p8) target bundleno = 5 (0x5), region = 85 }
 0x2ec   :  { %460 = vsyncpa [#allocation3], 1 }
 0x2ed   :  { %462 = vsyncpa [#allocation3 + $0x1], 1 }
 0x2ee   :  { %463 = vsyncpa [#allocation4], 1 }
 0x2ef   :  { %465 = vsyncpa [#allocation4 + $0x1], 1 }

// kernel: tpu_custom_call.1
= control target key start
LH: loop header
LB: loop body
LE: loop exit
PB: predicated region body
PF: predicated region fallthrough
CT: control target
= control target key end

     0   :  { %10 = vsyncpa [#allocation3], 0  ;;  %s884_s0 = inlined_call_operand.hbm [shape: f32[2,8,256], index: 0, kind: input, shape index: {}]   ;;  %s885_s1 = inlined_call_operand.vmem [shape: f32[8,2], index: 1, kind: input, shape index: {}]   ;;  %s886_s2 = inlined_call_operand.vmem [shape: f32[1,2], index: 2, kind: input, shape index: {}]   ;;  %s887_s3 = inlined_call_operand.vmem [shape: f32[2,8], index: 3, kind: input, shape index: {}]   ;;  %s888_s4 = inlined_call_operand.vmem [shape: f32[1,8], index: 4, kind: input, shape index: {}]   ;;  %s889_s5 = inlined_call_operand.hbm [shape: f32[2,8,256], index: 5, kind: output, shape index: {}]  }
   0x1   :  { %12 = vsyncpa [#allocation3 + $0x1], 0 }
   0x2   :  { %13 = vsyncpa [#allocation4], 0 }
   0x3   :  { %15 = vsyncpa [#allocation4 + $0x1], 0  ;;  %s721_s18 = smov 0   ;;  %s723_s19 = smov 0  }
   0x4   :  { %s725_s20 = smov 0   ;;  %s727_s21 = smov 0  }
   0x5 LB: > { %s742_s22 = sadd.s32 4294967295, %s685_s21   ;;  %s512_s23 = sadd.s32 4294967294, %s685_s21   ;;  %s685_s21 = sphi %s727_s21, %s906_s21   ;;  %s681_s20 = sphi %s725_s20, %s905_s20   ;;  %s677_s19 = sphi %s723_s19, %s904_s19   ;;  %s673_s18 = sphi %s721_s18, %s903_s18  }
   0x6   : > { %s746_s24 = sadd.s32 1, %s685_s21   ;;  %s28_s25 = sadd.s32 1, %s681_s20 }
   0x7   : > { %s25_s26 = ssub.s32 %s685_s21, %s746_s24  ;;  %p35_p0 = scmp.ne.s32.totalorder %s681_s20, %s677_s19 }
   0x8   : > { %p26_p1 = scmp.eq.s32.totalorder %s25_s26, 0  ;;  %p36_p2 = scmp.eq.s32.totalorder %s685_s21, 0 }
   0x9   : > { %p41_p3 = scmp.ne.s32.totalorder %s677_s19, %s673_s18  ;;  %p42_p4 = scmp.eq.s32.totalorder %s742_s22, 0 }
   0xa   : > { %s758_s27 = scalar_select %p26_p1, %s681_s20, %s28_s25  }
   0xb   : > { %p760_p5 = por %p36_p2, %p35_p0  ;;  %p764_p6 = por %p42_p4, %p41_p3 }
   0xc   : > { %p149_p7 = scmp.eq.s32.totalorder %s742_s22, 1  ;;  %p155_p8 = scmp.eq.s32.totalorder %s512_s23, 1 }
   0xd   : > { %s893_s29 = scalar_select %p764_p6, 1, 0 }
   0xe   : > { %p557_p10 = scmp.lt.s32.totalorder %s685_s21, 2  ;;  %p771_p11 = por %p149_p7, %p35_p0 }
   0xf   : > { %p775_p12 = por %p155_p8, %p41_p3  ;;  %s187_s7 = sand.u32 1, %s681_s20  }
  0x10   : > { %s894_s30 = scalar_select %p771_p11, 1, 0 }
  0x11   : > { %s895_s6 = scalar_select %p775_p12, 1, 0 }
  0x12   : > { %s529_s8 = sshll.u32 %s685_s21, 8  ;;  %s515_s9 = sshll.u32 %s187_s7, 4 }
  0x13   : > { %s784_s12 = scalar_lea.hbm %s884_s0, %s529_s8  ;;  %s191_s13 = scalar_lea.vmem [#allocation2], %s515_s9 }
  0x14   : > { %s199_s14 = sshll.u32 %s191_s13, 4  ;;  %p788_p13 = pnand %p557_p10, %p760_p5  ;;  %s792_s14 = int_to_ptr.vmem [resolvable:$true] %s199_s14 }
  0x15   : > { %s188_s16 = scalar_lea.sflag [#allocation3], %s187_s7  ;;  %s593_s17 = scalar_lea.hbm %s784_s12, 256 }
  0x16   : > { %p594_p2 = scmp.ne.s32.totalorder %s784_s12, %s593_s17  ;;  %p595_p3 = pneg %p788_p13 }
  0x17   : > { %s598_s26 = scalar_lea.hbm %s884_s0, 512  ;;  %p599_p5 = scmp.lt.s32.totalorder %s784_s12, %s884_s0 }
  0x18   : > { %p596_p4 = pnand %p595_p3, %p594_p2  ;;  %p600_p8 = scmp.lt.s32.totalorder %s598_s26, %s593_s17 }
  0x1a   : > { %p597_p7 = pneg %p596_p4  ;;  %p601_p10 = por %p600_p8, %p599_p5 }
  0x1c   : > { %p602_p9 = pnand %p601_p10, %p597_p7 }
  0x1e   : > { %605 = shalt.err (!%p602_p9)
}
  0x1f   : > { %s606_s7 = scalar_lea.vmem %s792_s14, 256  ;;  %s687_s9 = smov [#allocation2]  }
  0x20   : > { %p607_p0 = scmp.ne.s32.totalorder %s792_s14, %s606_s7  ;;  %s611_s10 = sshll.u32 %s687_s9, 4  ;;  %s612_s10 = int_to_ptr.vmem [resolvable:$false] %s611_s10 }
  0x21   : > { %s613_s11 = scalar_lea.vmem %s612_s10, 512  ;;  %p614_p4 = scmp.lt.s32.totalorder %s792_s14, %s612_s10 }
  0x22   : > { %p609_p1 = pnand %p607_p0, %p595_p3  ;;  %p615_p12 = scmp.lt.s32.totalorder %s613_s11, %s606_s7 }
  0x24   : > { %p610_p2 = pneg %p609_p1  ;;  %p616_p11 = por %p615_p12, %p614_p4 }
  0x26   : > { %p617_p6 = pnand %p616_p11, %p610_p2 }
  0x28   : > { %620 = shalt.err (!%p617_p6)
}
  0x29   : > { %552 = dma.hbm_to_vmem [thread:$0]  (!%p788_p13), %s784_s12, 256, %s792_s14, %s188_s16  }
  0x2a   : > { %p897_p9 = scmp.lt.s32.totalorder %s685_s21, 3  ;;  %p898_p7 = scmp.ge.s32.totalorder %s685_s21, 1 }
  0x2c   : > { %p205_p0 = pnand %p898_p7, %p897_p9 }
  0x2d   : > { %s819_s13 = sand.u32 (!%p205_p0), 1, %s677_s19   ;;  %p899_p6 = scmp.ne.s32.totalorder (!%p205_p0), %s893_s29, 0 }
  0x2e   : > { %208 = sbr.rel (%p205_p0) target bundleno = 733 (0x2dd), region = 40  ;;  %s519_s17 = sshll.u32 (!%p205_p0), %s819_s13, 4 }
  0x2f   : > { %s211_s23 = scalar_lea.sflag (!%p205_p0), [#allocation3], %s819_s13  ;;  %s214_s15 = scalar_lea.vmem (!%p205_p0), [#allocation2], %s519_s17 }
  0x33   : > { %664 = dma.done.wait (%p899_p6), %s211_s23, 256  }
  0x34   : > { %666 = vsyncadd (%p899_p6), %s211_s23, 4294967040  ;;  %v241_v0 = vld [vmem:[%s214_s15] sm:$0xff]  ;;  %v242_v1 = vld [vmem:[%s214_s15 + $0x8] sm:$0xff]  ;;  %v688_v3 = vmov 0.0   ;;  %vm689_vm0 = vmmov 0   ;;  %v250_v5 = vlaneseq  ;;  %vm256_vm1 = vcmask 64512  }
  0x35   : > { %v243_v2 = vadd.f32 %v242_v1, %v241_v0  ;;  %535 = vmatprep.subr.mxu0 %v688_v3  ;;  %v247_v4 = vld [vmem:[%s885_s1] sm:$0xff]  ;;  %540 = vmatprep.subr.mxu1 %v688_v3  ;;  %vm337_vm2 = vcmask 1041408   ;;  %vm333_vm3 = vcmask 15360   ;;  %s530_s7 = sshll.u32 %s742_s22, 8  ;;  %s240_s9 = scalar_lea.vmem [#allocation5], %s519_s17 }
  0x36   : > { %536 = vmatpush3.msra.mxu0 %v247_v4  ;;  %537 = vmatprep.mubr.msk.f32.mxu0 %vm689_vm0, %v688_v3  ;;  %v251_v6 = vand.u32 127, %v250_v5  ;;  %v253_v7 = vshrl.u32 %v250_v5, 7  ;;  %v331_v12 = vld [vmem:[%s887_s3] sm:$0x3]  ;;  %s442_s10 = sshll.u32 %s240_s9, 4  ;;  %s847_s15 = scalar_lea.hbm %s889_s5, %s530_s7  ;;  %s443_s10 = int_to_ptr.vmem [resolvable:$true] %s442_s10 }
  0x37   : > { %244 = vadd.xlane.f32.xlu0 %v243_v2  ;;  %542 = vmatprep.mubr.msk.f32.mxu1 %vm689_vm0, %v688_v3  ;;  %v248_v13 = vld [vmem:[%s886_s2] sm:$0x1]  ;;  %s428_s12 = scalar_lea.sflag [#allocation4], %s819_s13  ;;  %s621_s14 = scalar_lea.vmem %s443_s10, 256 }
  0x38   : > { %v254_v8 = vsub.s32 %v251_v6, %v253_v7  ;;  %541 = vmatpush3.msk.msra.mxu1 %vm337_vm2, %v331_v12  ;;  %v332_v19 = vld [vmem:[%s888_s4] sm:$0x1]  ;;  %v418_v27 = vsub.s32 0, %v253_v7  ;;  %p622_p11 = scmp.ne.s32.totalorder %s443_s10, %s621_s14  ;;  %p900_p12 = scmp.ne.s32.totalorder %s894_s30, 0 }
  0x39   : > { %s690_s22 = smov [#allocation5]  }
  0x3a   : > { %p623_p13 = pnand %p622_p11, %p900_p12  ;;  %s625_s17 = sshll.u32 %s690_s22, 4  ;;  %s626_s17 = int_to_ptr.vmem [resolvable:$false] %s625_s17 }
  0x3b   : > { %s627_s29 = scalar_lea.vmem %s626_s17, 512  ;;  %p628_p3 = scmp.lt.s32.totalorder %s443_s10, %s626_s17 }
  0x3c   : > { %p624_p1 = pneg %p623_p13  ;;  %p629_p5 = scmp.lt.s32.totalorder %s627_s29, %s621_s14 }
  0x3e   : > { %p630_p8 = por %p629_p5, %p628_p3 }
  0x40   : > { %p631_p10 = pnand %p630_p8, %p624_p1 }
  0xc0   : > { %v245_v9 = vpop.xlane.xlu0 %244 }
  0xc1   : > { %v246_v10 = vmul.f32 0.00390625, %v245_v9 }
  0xc3   : > { %v255_v11 = vrot.slane %v246_v10, %v254_v8 }
  0xc5   : > { %538 = vmatmul.mubr.msk.f32.vlgmr.msra.gmra.mxu0 %vm256_vm1, %v255_v11 }
 0x185   : > { %v325_v14 = vpop.f32.mrf.mxu0 }
 0x186   : > { %v326_v15 = vadd.f32 %v325_v14, %v248_v13 }
 0x187   : > { %v539_v16 = vpop.f32.mrf.mxu0 }
 0x188   : > { %v329_v17 = vmax.f32 %v326_v15, 0.0 }
 0x18a   : > { %v330_v18 = vmin.f32 %v329_v17, 6.0 }
 0x18c   : > { %543 = vmatmul.mubr.msk.f32.vlgmr.msra.gmra.mxu1 %vm333_vm3, %v330_v18 }
 0x24c   : > { %v407_v20 = vpop.f32.mrf.mxu1 }
 0x24d   : > { %v408_v21 = vadd.f32 %v407_v20, %v332_v19 }
 0x24e   : > { %v544_v22 = vpop.f32.mrf.mxu1 }
 0x24f   : > { %v411_v23 = vadd.f32 3.0, %v408_v21 }
 0x251   : > { %v412_v24 = vmax.f32 %v411_v23, 0.0 }
 0x253   : > { %v413_v25 = vmin.f32 %v412_v24, 6.0 }
 0x255   : > { %v414_v26 = vmul.f32 %v413_v25, %v408_v21 }
 0x257   : > { %v415_v28 = vmul.f32 0.16666667, %v414_v26 }
 0x259   : > { %v419_v29 = vrot.slane %v415_v28, %v418_v27 }
 0x25b   : > { %421 = vbcast.lane.b32.xlu0 %v419_v29, 256 }
 0x2cd   : > { %v422_v30 = vpop.permute.xlu0 %421 }
 0x2ce   : > { %v423_v31 = vmul.f32 %v422_v30, %v241_v0  ;;  %v424_v32 = vmul.f32 %v422_v30, %v242_v1 }
 0x2d0   : > { %425 = vst [vmem:[%s240_s9] sm:$0xff] %v423_v31  ;;  %426 = vst [vmem:[%s240_s9 + $0x8] sm:$0xff] %v424_v32 }
 0x2d1   : > { %634 = shalt.err (!%p631_p10)
}
 0x2d2   : > { %s635_s16 = scalar_lea.hbm %s847_s15, 256  ;;  %s639_s26 = scalar_lea.hbm %s889_s5, 512 }
 0x2d3   : > { %p636_p2 = scmp.ne.s32.totalorder %s847_s15, %s635_s16  ;;  %p640_p7 = scmp.lt.s32.totalorder %s847_s15, %s889_s5 }
 0x2d4   : > { %p641_p0 = scmp.lt.s32.totalorder %s639_s26, %s635_s16 }
 0x2d5   : > { %p637_p4 = pnand %p636_p2, %p900_p12 }
 0x2d6   : > { %p642_p6 = por %p641_p0, %p640_p7 }
 0x2d7   : > { %p638_p9 = pneg %p637_p4 }
 0x2d9   : > { %p643_p11 = pnand %p642_p6, %p638_p9 }
 0x2db   : > { %646 = shalt.err (!%p643_p11)
}
 0x2dc   : > { %547 = dma.vmem_to_hbm [thread:$0]  (%p900_p12), %s443_s10, 256, %s847_s15, %s428_s12  }
 0x2dd PF: > { %s454_s7 = sand.u32 1, %s673_s18   ;;  %p901_p13 = scmp.ne.s32.totalorder %s895_s6, 0 }
 0x2de   : > { %p902_p1 = scmp.ge.s32.totalorder %s685_s21, 2  ;;  %s455_s9 = scalar_lea.sflag [#allocation4], %s454_s7 }
 0x2e0   : > { %p554_p3 = pnand %p902_p1, %p901_p13 }
 0x2e2   : > { %p555_p5 = pneg %p554_p3 }
 0x2e4   : > { %668 = dma.done.wait (%p555_p5), %s455_s9, 256  }
 0x2e5   : > { %670 = vsyncadd (%p555_p5), %s455_s9, 4294967040  ;;  %p18_p8 = scmp.ge.s32.totalorder %s746_s24, 4   ;;  %s903_s18 = smov %s677_s19 }
 0x2e6   : > { %s904_s19 = smov %s681_s20  ;;  %s905_s20 = smov %s758_s27 }
 0x2e7   : > { %s906_s21 = smov %s746_s24  ;;  %20 = sbr.rel (!%p18_p8) target bundleno = 5 (0x5), region = 85 }
 0x2ec   :  { %460 = vsyncpa [#allocation3], 1 }
 0x2ed   :  { %462 = vsyncpa [#allocation3 + $0x1], 1 }
 0x2ee   :  { %463 = vsyncpa [#allocation4], 1 }
 0x2ef   :  { %465 = vsyncpa [#allocation4 + $0x1], 1 }

</bundles_post_ra>
